<compile_context>
chip_gen: v6e
topology: v6e:2x2x1
jax: 0.10.0
libtpu: 0.0.40
codegen_flags: <defaults>
</compile_context>

<pallas_src>
import jax
import jax.numpy as jnp
from jax.experimental import pallas as pl
from jax.experimental.pallas import tpu as pltpu


# ----------------------------- kernels --------------------------------------


def _linear_value_packed_kernel(x_ref, w_ref, s_ref, w_time_ref, out_ref):
    # x_ref:      (TP, 128) VMEM  R = 128//D original rows packed per sublane row
    # w_ref:      (2, 128)  VMEM  row 0: w(state) tiled, row 1: w(state**2) tiled
    # s_ref:      (128, R)  VMEM  block-diagonal 0/1 segment-sum matrix
    # w_time_ref: (4,)      SMEM  weights for [t, t^2, t^3, 1]
    # out_ref:    (TP, R)   VMEM  value for original row p*R + r at [p, r]
    x = x_ref[...].astype(jnp.float32)                       # upcast in-register
    w = w_ref[...]
    w_s, w_s2 = w[0:1, :], w[1:2, :]

    # Fully lane-dense VPU work: x*w_s + x^2*w_s2 (no reduction yet).
    y = x * (w_s + x * w_s2)                                 # (TP, 128)

    # Segmented per-row sum on the (otherwise idle) MXU instead of the XLU.
    s12 = jax.lax.dot_general(
        y, s_ref[...],
        dimension_numbers=(((1,), (0,)), ((), ())),
        preferred_element_type=jnp.float32,
        precision=jax.lax.Precision.HIGHEST)                 # (TP, R)

    # Time polynomial in the same packed layout, from the GLOBAL row index.
    # (int32 index, cast to f32 -- matches the reference's float32 arange;
    #  both lose integer exactness only above 2^24 rows.)
    tp, r_per = out_ref.shape
    p_idx = jax.lax.broadcasted_iota(jnp.int32, (tp, r_per), 0)
    r_idx = jax.lax.broadcasted_iota(jnp.int32, (tp, r_per), 1)
    row = (pl.program_id(0) * tp + p_idx) * r_per + r_idx
    al = row.astype(jnp.float32) * 0.01
    w_t, w_t2, w_t3, w_c = (w_time_ref[0], w_time_ref[1],
                            w_time_ref[2], w_time_ref[3])
    t_term = ((w_t3 * al + w_t2) * al + w_t) * al + w_c       # Horner

    out_ref[...] = (s12 + t_term).astype(out_ref.dtype)


def _linear_value_rowwise_kernel(state_ref, w_state_ref, w_time_ref, out_ref):
    # Generic-D fallback: (TILE_N, D) block, per-row cross-lane reduce.
    x = state_ref[...].astype(jnp.float32)                   # (TN, D)
    tn = x.shape[0]
    w = w_state_ref[...]
    w_s, w_s2 = w[0:1, :], w[1:2, :]
    s12 = jnp.sum(x * (w_s + x * w_s2), axis=-1, keepdims=True)   # (TN, 1)

    row = pl.program_id(0) * tn + jax.lax.broadcasted_iota(jnp.int32, (tn, 1), 0)
    al = row.astype(jnp.float32) * 0.01
    w_t, w_t2, w_t3, w_c = (w_time_ref[0], w_time_ref[1],
                            w_time_ref[2], w_time_ref[3])
    t_term = ((w_t3 * al + w_t2) * al + w_t) * al + w_c
    out_ref[...] = (s12 + t_term).astype(out_ref.dtype)


# ----------------------------- wrappers --------------------------------------


def _round_up(x, m):
    return ((x + m - 1) // m) * m


_MAX_TILE_P = 4096     # 4096 x 128 x 4B = 2 MiB per f32 input buffer
_MIN_SPLIT_P = 2048    # above this, force >= 2 grid steps (v7x two-TC split)


def _choose_tile_p(p, sub, tile_rows, r_per):
    if tile_rows is not None:
        tp = _round_up(max(1, pl.cdiv(tile_rows, r_per)), sub)
        return p if tp >= p else tp
    if p <= _MIN_SPLIT_P:
        return p                                   # single step, full block
    return min(_MAX_TILE_P, _round_up(pl.cdiv(p, 2), sub))


def _forward_packed(state, w_state, w_time, n, d, tile_rows):
    r_per = 128 // d
    n_pad = _round_up(n, r_per)
    if n_pad != n:
        state = jnp.pad(state, ((0, n_pad - n), (0, 0)))     # zero rows at tail
    p = n_pad // r_per
    packed = state.reshape(p, d * r_per)                     # (P, 128) free view
    w_tiled = jnp.tile(w_state, (1, r_per))                  # (2, 128)
    lane = jnp.arange(128)
    seg = jnp.arange(r_per)
    s_mat = (lane[:, None] // d == seg[None, :]).astype(jnp.float32)  # (128, R)

    sub = 16 if state.dtype == jnp.bfloat16 else 8
    tile_p = _choose_tile_p(p, sub, tile_rows, r_per)
    grid = (pl.cdiv(p, tile_p),)

    out = pl.pallas_call(
        _linear_value_packed_kernel,
        out_shape=jax.ShapeDtypeStruct((p, r_per), jnp.float32),
        grid=grid,
        in_specs=[
            pl.BlockSpec((tile_p, 128), lambda i: (i, 0)),    # tiled packed rows
            pl.BlockSpec((2, 128), lambda i: (0, 0)),         # resident weights
            pl.BlockSpec((128, r_per), lambda i: (0, 0)),     # resident seg-sum S
            pl.BlockSpec(memory_space=pltpu.MemorySpace.SMEM),
        ],
        out_specs=pl.BlockSpec((tile_p, r_per), lambda i: (i, 0)),
        compiler_params=pltpu.CompilerParams(
            dimension_semantics=("parallel",),
            vmem_limit_bytes=32 * 1024 * 1024,
        ),
    )(packed, w_tiled, s_mat, w_time)
    return out.reshape(n_pad, 1)[:n]


def _forward_rowwise(state, w_state, w_time, n, d, tile_rows):
    sub = 16 if state.dtype == jnp.bfloat16 else 8
    if tile_rows is None:
        tile_rows = 8192
    tn = n if n <= tile_rows else min(n, _round_up(tile_rows, sub))
    grid = (pl.cdiv(n, tn),)
    return pl.pallas_call(
        _linear_value_rowwise_kernel,
        out_shape=jax.ShapeDtypeStruct((n, 1), jnp.float32),
        grid=grid,
        in_specs=[
            pl.BlockSpec((tn, d), lambda i: (i, 0)),
            pl.BlockSpec((2, d), lambda i: (0, 0)),
            pl.BlockSpec(memory_space=pltpu.MemorySpace.SMEM),
        ],
        out_specs=pl.BlockSpec((tn, 1), lambda i: (i, 0)),
        compiler_params=pltpu.CompilerParams(
            dimension_semantics=("parallel",),
            vmem_limit_bytes=32 * 1024 * 1024,
        ),
    )(state, w_state, w_time)


def linear_value_forward(state, weight, *, tile_rows=None):
    """state: (N, D) f32/bf16; weight: (1, 2D+4) (nn.Linear weight, no bias)."""
    n, d = state.shape
    assert weight.shape == (1, 2 * d + 4)
    w_flat = weight.reshape(-1).astype(jnp.float32)
    w_state = w_flat[: 2 * d].reshape(2, d)      # row 0: state, row 1: state**2
    w_time = w_flat[2 * d:]                      # (4,) -> [t, t^2, t^3, 1]
    if d <= 128 and 128 % d == 0:
        return _forward_packed(state, w_state, w_time, n, d, tile_rows)
    # TODO(synk): add a lane-packed path for D > 128 (D a multiple of 128).
    return _forward_rowwise(state, w_state, w_time, n, d, tile_rows)


# ----------------------------- reference -------------------------------------


def _reference_forward(state, weight):
    """Plain-JAX replica of LinearValue.forward (exact f32, no matmul demotion)."""
    n = state.shape[0]
    s = state.astype(jnp.float32)
    ones = jnp.ones((n, 1), jnp.float32)
    al = (jnp.arange(n, dtype=jnp.float32).reshape(-1, 1)) / 100.0
    feats = jnp.concatenate([s, s ** 2, al, al ** 2, al ** 3, ones], axis=1)
    w = weight.astype(jnp.float32).reshape(1, -1)
    return jnp.sum(feats * w, axis=1, keepdims=True)


# ----------------------------- tests ------------------------------------------


if __name__ == "__main__":
    key = jax.random.PRNGKey(0)
    k_s1, k_w, k_s2, k_s3, k_s4, k_w4 = jax.random.split(key, 6)

    # Case 1: small single-tile case (N=8 states, input_size D=16 -> 36 features).
    N, D = 8, 16
    F = 2 * D + 4
    state = jax.random.normal(k_s1, (N, D), dtype=jnp.float32)
    bound = 1.0 / (F ** 0.5)   # nn.Linear default init range, fan_in = F
    weight = jax.random.uniform(k_w, (1, F), minval=-bound, maxval=bound,
                                dtype=jnp.float32)
    out = jax.block_until_ready(linear_value_forward(state, weight))
    ref = _reference_forward(state, weight)
    assert out.shape == (N, 1)
    assert jnp.allclose(out, ref, atol=1e-4, rtol=1e-4), (out, ref)

    # Case 2: multi grid step, padded partial tile, global time-index offset,
    # and N not a multiple of the packing factor.
    N2 = 300
    state2 = jax.random.normal(k_s2, (N2, D), dtype=jnp.float32)
    out2 = jax.block_until_ready(linear_value_forward(state2, weight, tile_rows=128))
    ref2 = _reference_forward(state2, weight)
    assert out2.shape == (N2, 1)
    assert jnp.allclose(out2, ref2, atol=1e-4, rtol=1e-4), (out2, ref2)

    # Case 3: default large-tile path (auto >=2 grid steps for big N).
    N3 = 20000
    state3 = jax.random.normal(k_s3, (N3, D), dtype=jnp.float32)
    out3 = jax.block_until_ready(linear_value_forward(state3, weight))
    ref3 = _reference_forward(state3, weight)
    assert out3.shape == (N3, 1)
    # Late rows are dominated by (t/100)^3 ~ 1e6-scale f32 values; use a
    # magnitude-aware tolerance for the unavoidable f32 ordering differences.
    tol3 = 1e-4 + 1e-4 * float(jnp.max(jnp.abs(ref3)))
    assert jnp.allclose(out3, ref3, atol=tol3, rtol=1e-4), (
        float(jnp.max(jnp.abs(out3 - ref3))), tol3)

    # Case 4: generic-D fallback path (D does not divide 128).
    N4, D4 = 40, 24
    F4 = 2 * D4 + 4
    state4 = jax.random.normal(k_s4, (N4, D4), dtype=jnp.float32)
    bound4 = 1.0 / (F4 ** 0.5)
    weight4 = jax.random.uniform(k_w4, (1, F4), minval=-bound4, maxval=bound4,
                                 dtype=jnp.float32)
    out4 = jax.block_until_ready(linear_value_forward(state4, weight4, tile_rows=16))
    ref4 = _reference_forward(state4, weight4)
    assert out4.shape == (N4, 1)
    assert jnp.allclose(out4, ref4, atol=1e-4, rtol=1e-4), (out4, ref4)

    print("KERNEL_OK")
</pallas_src>

<mosaic_0001>
module attributes {stable_mosaic.version = 11 : i64} {
  func.func @_linear_value_packed_kernel(%arg0: i32, %arg1: memref<1x128xf32, #tpu.memory_space<vmem>>, %arg2: memref<2x128xf32, #tpu.memory_space<vmem>>, %arg3: memref<128x8xf32, #tpu.memory_space<vmem>>, %arg4: memref<4xf32, #tpu.memory_space<smem>>, %arg5: memref<1x8xf32, #tpu.memory_space<vmem>>) attributes {dimension_semantics = [#tpu.dimension_semantics<parallel>], iteration_bounds = array<i64: 1>, scalar_prefetch = 0 : i64, scratch_operands = 0 : i64, tpu.core_type = #tpu.core_type<tc>, window_params = [{transform_indices = @transform_0, window_bounds = array<i64: 1, 128>}, {pipeline_mode = #tpu.pipeline_mode<synchronous>, transform_indices = @transform_1, window_bounds = array<i64: 2, 128>}, {pipeline_mode = #tpu.pipeline_mode<synchronous>, transform_indices = @transform_2, window_bounds = array<i64: 128, 8>}, {transform_indices = @transform_3, window_bounds = array<i64: 4>}, {transform_indices = @transform_4, window_bounds = array<i64: 1, 8>}]} {
    %c0 = arith.constant 0 : index
    %c0_0 = arith.constant 0 : index
    %0 = vector.load %arg1[%c0, %c0_0] : memref<1x128xf32, #tpu.memory_space<vmem>>, vector<1x128xf32>
    %c0_1 = arith.constant 0 : index
    %c0_2 = arith.constant 0 : index
    %1 = vector.load %arg2[%c0_1, %c0_2] : memref<2x128xf32, #tpu.memory_space<vmem>>, vector<2x128xf32>
    %2 = vector.extract_strided_slice %1 {offsets = [0, 0], sizes = [1, 128], strides = [1, 1]} : vector<2x128xf32> to vector<1x128xf32>
    %3 = vector.extract_strided_slice %1 {offsets = [1, 0], sizes = [1, 128], strides = [1, 1]} : vector<2x128xf32> to vector<1x128xf32>
    %4 = arith.mulf %0, %3 : vector<1x128xf32>
    %5 = arith.addf %2, %4 : vector<1x128xf32>
    %6 = arith.mulf %0, %5 : vector<1x128xf32>
    %c0_3 = arith.constant 0 : index
    %c0_4 = arith.constant 0 : index
    %7 = vector.load %arg3[%c0_3, %c0_4] : memref<128x8xf32, #tpu.memory_space<vmem>>, vector<128x8xf32>
    %cst = arith.constant dense<0.000000e+00> : vector<1x8xf32>
    %8 = tpu.matmul %6, %7, %cst {dimension_numbers = #tpu.dot_dimension_numbers<[1], [0], [0], [1], [0, 0, 1, 1], [], []>, precision = #tpu.contract_precision<fp32>} : vector<1x128xf32>, vector<128x8xf32>, vector<1x8xf32> -> vector<1x8xf32>
    %9 = tpu.iota {dimensions = array<i32: 0>} : vector<1x8xi32>
    %10 = tpu.iota {dimensions = array<i32: 1>} : vector<1x8xi32>
    %c1_i32 = arith.constant 1 : i32
    %11 = arith.muli %arg0, %c1_i32 : i32
    %12 = vector.broadcast %11 : i32 to vector<1x8xi32>
    %13 = arith.addi %12, %9 : vector<1x8xi32>
    %c8_i32 = arith.constant 8 : i32
    %14 = vector.broadcast %c8_i32 : i32 to vector<1x8xi32>
    %15 = arith.muli %13, %14 : vector<1x8xi32>
    %16 = arith.addi %15, %10 : vector<1x8xi32>
    %17 = arith.sitofp %16 : vector<1x8xi32> to vector<1x8xf32>
    %cst_5 = arith.constant 0.00999999977 : f32
    %18 = vector.broadcast %cst_5 : f32 to vector<1x8xf32>
    %19 = arith.mulf %17, %18 : vector<1x8xf32>
    %c0_6 = arith.constant 0 : index
    %20 = memref.load %arg4[%c0_6] : memref<4xf32, #tpu.memory_space<smem>>
    %c1 = arith.constant 1 : index
    %21 = memref.load %arg4[%c1] : memref<4xf32, #tpu.memory_space<smem>>
    %c2 = arith.constant 2 : index
    %22 = memref.load %arg4[%c2] : memref<4xf32, #tpu.memory_space<smem>>
    %c3 = arith.constant 3 : index
    %23 = memref.load %arg4[%c3] : memref<4xf32, #tpu.memory_space<smem>>
    %24 = vector.broadcast %22 : f32 to vector<1x8xf32>
    %25 = arith.mulf %24, %19 : vector<1x8xf32>
    %26 = vector.broadcast %21 : f32 to vector<1x8xf32>
    %27 = arith.addf %25, %26 : vector<1x8xf32>
    %28 = arith.mulf %27, %19 : vector<1x8xf32>
    %29 = vector.broadcast %20 : f32 to vector<1x8xf32>
    %30 = arith.addf %28, %29 : vector<1x8xf32>
    %31 = arith.mulf %30, %19 : vector<1x8xf32>
    %32 = vector.broadcast %23 : f32 to vector<1x8xf32>
    %33 = arith.addf %31, %32 : vector<1x8xf32>
    %34 = arith.addf %8, %33 : vector<1x8xf32>
    %c0_7 = arith.constant 0 : index
    %c0_8 = arith.constant 0 : index
    %35 = vector.load %arg5[%c0_7, %c0_8] : memref<1x8xf32, #tpu.memory_space<vmem>>, vector<1x8xf32>
    tpu.vector_store %arg5[%c0_7, %c0_8], %34 {strides = array<i32>} : memref<1x8xf32, #tpu.memory_space<vmem>>, vector<1x8xf32>,
    return
  }
  func.func @transform_0(%arg0: i32) -> (i32, i32) {
    %c0_i32 = arith.constant 0 : i32
    %c0_i32_0 = arith.constant 0 : i32
    return %arg0, %c0_i32 : i32, i32
  }
  func.func @transform_1(%arg0: i32) -> (i32, i32) {
    %c0_i32 = arith.constant 0 : i32
    %c0_i32_0 = arith.constant 0 : i32
    %c0_i32_1 = arith.constant 0 : i32
    return %c0_i32, %c0_i32_0 : i32, i32
  }
  func.func @transform_2(%arg0: i32) -> (i32, i32) {
    %c0_i32 = arith.constant 0 : i32
    %c0_i32_0 = arith.constant 0 : i32
    %c0_i32_1 = arith.constant 0 : i32
    return %c0_i32, %c0_i32_0 : i32, i32
  }
  func.func @transform_3(%arg0: i32) -> i32 {
    %c0_i32 = arith.constant 0 : i32
    %c0_i32_0 = arith.constant 0 : i32
    return %c0_i32 : i32
  }
  func.func @transform_4(%arg0: i32) -> (i32, i32) {
    %c0_i32 = arith.constant 0 : i32
    %c0_i32_0 = arith.constant 0 : i32
    return %arg0, %c0_i32 : i32, i32
  }
}

</mosaic_0001>

<bundles_post_ra>
// kernel: tpu_custom_call.1
= control target key start
LH: loop header
LB: loop body
LE: loop exit
PB: predicated region body
PF: predicated region fallthrough
CT: control target
= control target key end

     0   :  { %9 = vsyncpa [#allocation4], 0  ;;  %s1563_s0 = inlined_call_operand.vmem [shape: f32[1,128], index: 0, kind: input, shape index: {}]   ;;  %s1564_s1 = inlined_call_operand.vmem [shape: f32[2,128], index: 1, kind: input, shape index: {}]   ;;  %s1565_s2 = inlined_call_operand.vmem [shape: f32[128,8], index: 2, kind: input, shape index: {}]   ;;  %s1566_s3 = inlined_call_operand.vmem [shape: f32[4], index: 3, kind: input, shape index: {}]   ;;  %s1567_s4 = inlined_call_operand.hbm [shape: f32[1,8], index: 4, kind: output, shape index: {}]  }
   0x1   :  { %10 = vsyncpa [#allocation3], 0  ;;  %s23_s17 = sshll.u32 %s1566_s3, 4  ;;  %s24_s17 = int_to_ptr.vmem [resolvable:$true] %s23_s17 }
   0x2   :  { %s1071_s18 = scalar_lea.vmem %s24_s17, 16  ;;  %p1076_p1 = scmp.lt.s32.totalorder %s24_s17, %s24_s17 }
   0x3   :  { %p1072_p0 = scmp.ne.s32.totalorder %s24_s17, %s1071_s18  ;;  %p1077_p2 = scmp.lt.s32.totalorder %s1071_s18, %s1071_s18 }
   0x5   :  { %p1078_p3 = por %p1077_p2, %p1076_p1 }
   0x7   :  { %p1079_p4 = pnand %p1078_p3, %p1072_p0 }
   0x9   :  { %1082 = shalt.err (!%p1079_p4)
}
   0xa   :  { %s1107_s19 = smov [#allocation2]  }
   0xb   :  { %26 = dma.vmem_to_smem %s24_s17, 16, %s1107_s19, [#allocation4]  }
   0xc   :  { %1103 = dma.done.wait [#allocation4], 16  }
   0xd   :  { %1104 = vsyncadd [#allocation4], 4294967280 }
   0xe   :  { %30 = sfence }
   0xf   :  { %v68_v0 = vld [vmem:[%s1565_s2 + $0x78] sm:$0xff]  ;;  %v67_v1 = vld [vmem:[%s1565_s2 + $0x70] sm:$0xff]  ;;  %v66_v2 = vld [vmem:[%s1565_s2 + $0x68] sm:$0xff]  ;;  %v1108_v3 = vmov 0.0   ;;  %vm1109_vm0 = vmmov 0   ;;  %v37_v48 = vlaneseq  ;;  %s751_s26 = sld [smem:[#allocation2 + $0x1]] }
  0x10   :  { %856 = vmatprep.subr.mxu0 %v1108_v3  ;;  %v1150_v4 = vand.u32 4294901760, %v68_v0  ;;  %v1152_v5 = vand.u32 4294901760, %v67_v1  ;;  %v1154_v6 = vand.u32 4294901760, %v66_v2  ;;  %v65_v7 = vld [vmem:[%s1565_s2 + $0x60] sm:$0xff]  ;;  %891 = vmatprep.subr.mxu1 %v1108_v3  ;;  %v64_v8 = vld [vmem:[%s1565_s2 + $0x58] sm:$0xff]  ;;  %v63_v9 = vld [vmem:[%s1565_s2 + $0x50] sm:$0xff] }
  0x11   :  { %v1166_v10 = vand.u32 4294901760, %v65_v7  ;;  %v1168_v11 = vand.u32 4294901760, %v64_v8  ;;  %v1170_v12 = vand.u32 4294901760, %v63_v9  ;;  %v62_v13 = vld [vmem:[%s1565_s2 + $0x48] sm:$0xff]  ;;  %v61_v14 = vld [vmem:[%s1565_s2 + $0x40] sm:$0xff]  ;;  %888 = vmatprep.mubr.msk.f32.mxu0 %vm1109_vm0, %v1108_v3  ;;  %923 = vmatprep.mubr.msk.f32.mxu1 %vm1109_vm0, %v1108_v3  ;;  %v60_v19 = vld [vmem:[%s1565_s2 + $0x38] sm:$0xff] }
  0x12   :  { %857 = vmatpush3.msra.mxu0 %v1150_v4  ;;  %v1184_v15 = vsub.f32 %v68_v0, %v1150_v4  ;;  %v1187_v16 = vsub.f32 %v67_v1, %v1152_v5  ;;  %v1189_v17 = vand.u32 4294901760, %v62_v13  ;;  %v1192_v18 = vsub.f32 %v66_v2, %v1154_v6  ;;  %v59_v26 = vld [vmem:[%s1565_s2 + $0x30] sm:$0xff]  ;;  %v58_v34 = vld [vmem:[%s1565_s2 + $0x28] sm:$0xff]  ;;  %v57_v43 = vld [vmem:[%s1565_s2 + $0x20] sm:$0xff]  ;;  %s79_s27 = sld [smem:[#allocation2]]  ;;  %s1111_s29 = smov [#allocation5]  }
  0x13   :  { %858 = vmatprep.subr.mxu0 %v1108_v3  ;;  %v1199_v20 = vsub.f32 %v65_v7, %v1166_v10  ;;  %v1202_v21 = vsub.f32 %v64_v8, %v1168_v11  ;;  %v1208_v25 = vand.u32 4294901760, %v61_v14  ;;  %v1215_v28 = vand.u32 4294901760, %v60_v19  ;;  %v56_v50 = vld [vmem:[%s1565_s2 + $0x18] sm:$0xff]  ;;  %v55_v57 = vld [vmem:[%s1565_s2 + $0x10] sm:$0xff]  ;;  %v54_v2 = vld [vmem:[%s1565_s2 + $0x8] sm:$0xff]  ;;  %s753_s28 = sld [smem:[#allocation2 + $0x3]] }
  0x14   :  { %859 = vmatpush3.msra.mxu0 %v1152_v5  ;;  %v187_v22 = vand.u32 4294901760, %v1184_v15  ;;  %v194_v23 = vand.u32 4294901760, %v1187_v16  ;;  %v201_v24 = vand.u32 4294901760, %v1192_v18  ;;  %v1219_v30 = vsub.f32 %v63_v9, %v1170_v12  ;;  %v53_v9 = vld [vmem:[%s1565_s2] sm:$0xff]  ;;  %s742_s30 = sshll.u32 %s1111_s29, 4  ;;  %s743_s30 = int_to_ptr.vmem [resolvable:$true] %s742_s30 }
  0x15   :  { %860 = vmatprep.subr.mxu0 %v1108_v3  ;;  %v208_v27 = vand.u32 4294901760, %v1199_v20  ;;  %v215_v29 = vand.u32 4294901760, %v1202_v21  ;;  %v1235_v35 = vsub.f32 %v62_v13, %v1189_v17  ;;  %v1238_v36 = vand.u32 4294901760, %v59_v26  ;;  %s1083_s5 = scalar_lea.vmem %s743_s30, 16  ;;  %s1087_s6 = scalar_lea.vmem %s743_s30, 32 }
  0x16   :  { %861 = vmatpush3.msra.mxu0 %v1154_v6  ;;  %v188_v31 = vsub.f32 %v1184_v15, %v187_v22  ;;  %v195_v32 = vsub.f32 %v1187_v16, %v194_v23  ;;  %v202_v33 = vsub.f32 %v1192_v18, %v201_v24  ;;  %v222_v40 = vand.u32 4294901760, %v1219_v30  ;;  %p1084_p5 = scmp.ne.s32.totalorder %s743_s30, %s1083_s5  ;;  %p1088_p6 = scmp.lt.s32.totalorder %s743_s30, %s743_s30 }
  0x17   :  { %862 = vmatprep.subr.mxu0 %v1108_v3  ;;  %v209_v39 = vsub.f32 %v1199_v20, %v208_v27  ;;  %v216_v41 = vsub.f32 %v1202_v21, %v215_v29  ;;  %v1249_v42 = vand.u32 4294901760, %v58_v34  ;;  %v1255_v44 = vsub.f32 %v61_v14, %v1208_v25  ;;  %p1089_p7 = scmp.lt.s32.totalorder %s1087_s6, %s1083_s5 }
  0x18   :  { %863 = vmatpush3.msra.mxu0 %v1166_v10  ;;  %v189_v37 = vand.u32 4294901760, %v188_v31  ;;  %v196_v38 = vand.u32 4294901760, %v195_v32  ;;  %v203_v45 = vand.u32 4294901760, %v202_v33  ;;  %v229_v46 = vand.u32 4294901760, %v1235_v35  ;;  %v32_v31 = vld [vmem:[%s1564_s1] sm:$0x3] }
  0x19   :  { %864 = vmatprep.subr.mxu0 %v1108_v3  ;;  %v1260_v47 = vsub.f32 %v60_v19, %v1215_v28  ;;  %v236_v49 = vand.u32 4294901760, %v1255_v44  ;;  %v1269_v51 = vsub.f32 %v59_v26, %v1238_v36  ;;  %v210_v52 = vand.u32 4294901760, %v209_v39  ;;  %p1090_p8 = por %p1089_p7, %p1088_p6 }
  0x1a   :  { %865 = vmatpush3.msra.mxu0 %v1168_v11  ;;  %892 = vmatpush3.msra.mxu1 %v189_v37  ;;  %v223_v53 = vsub.f32 %v1219_v30, %v222_v40  ;;  %v1275_v54 = vand.u32 4294901760, %v57_v43  ;;  %v217_v55 = vand.u32 4294901760, %v216_v41  ;;  %v1284_v58 = vsub.f32 %v58_v34, %v1249_v42 }
  0x1b   :  { %866 = vmatprep.subr.mxu0 %v1108_v3  ;;  %893 = vmatprep.subr.mxu1 %v1108_v3  ;;  %v243_v56 = vand.u32 4294901760, %v1260_v47  ;;  %v230_v59 = vsub.f32 %v1235_v35, %v229_v46  ;;  %v1290_v60 = vand.u32 4294901760, %v56_v50  ;;  %v1110_v61 = vmov 1966171168   ;;  %p1091_p9 = pnand %p1090_p8, %p1084_p5 }
  0x1c   :  { %867 = vmatpush3.msra.mxu0 %v1170_v12  ;;  %894 = vmatpush3.msra.mxu1 %v196_v38  ;;  %v35_v62 = vunpack.c.l.s4 %v1110_v61  ;;  %v38_v63 = vshrl.u32 %v37_v48, 7  ;;  %v237_v0 = vsub.f32 %v1255_v44, %v236_v49  ;;  %v250_v1 = vand.u32 4294901760, %v1269_v51 }
  0x1d   :  { %868 = vmatprep.subr.mxu0 %v1108_v3  ;;  %895 = vmatprep.subr.mxu1 %v1108_v3  ;;  %v224_v7 = vand.u32 4294901760, %v223_v53  ;;  %v1302_v8 = vand.u32 4294901760, %v55_v57  ;;  %v1308_v13 = vsub.f32 %v57_v43, %v1275_v54  ;;  %v244_v19 = vsub.f32 %v1260_v47, %v243_v56 }
  0x1e   :  { %869 = vmatpush3.msra.mxu0 %v1189_v17  ;;  %896 = vmatpush3.msra.mxu1 %v203_v45  ;;  %v36_v14 = vunpack.c.0.s8 %v35_v62  ;;  %v257_v26 = vand.u32 4294901760, %v1284_v58  ;;  %v231_v32 = vand.u32 4294901760, %v230_v59  ;;  %v1320_v33 = vand.u32 4294901760, %v54_v2 }
  0x1f   :  { %870 = vmatprep.subr.mxu0 %v1108_v3  ;;  %897 = vmatprep.subr.mxu1 %v1108_v3  ;;  %v1323_v37 = vsub.f32 %v56_v50, %v1290_v60  ;;  %v238_v38 = vand.u32 4294901760, %v237_v0  ;;  %v251_v39 = vsub.f32 %v1269_v51, %v250_v1  ;;  %v1330_v41 = vand.u32 4294901760, %v53_v9  ;;  %v31_v0 = vld [vmem:[%s1563_s0] sm:$0x1]  ;;  %s752_s0 = sld [smem:[#allocation2 + $0x2]] }
  0x20   :  { %871 = vmatpush3.msra.mxu0 %v1208_v25  ;;  %898 = vmatpush3.msra.mxu1 %v210_v52  ;;  %v39_v34 = vsub.s32 %v36_v14, %v38_v63  ;;  %v72_v43 = vand.u32 127, %v37_v48  ;;  %v264_v45 = vand.u32 4294901760, %v1308_v13  ;;  %v1335_v50 = vsub.f32 %v55_v57, %v1302_v8 }
  0x21   :  { %872 = vmatprep.subr.mxu0 %v1108_v3  ;;  %899 = vmatprep.subr.mxu1 %v1108_v3  ;;  %v75_v53 = vmul.u32 8, %v38_v63  ;;  %v258_v59 = vsub.f32 %v1284_v58, %v257_v26  ;;  %v271_v61 = vand.u32 4294901760, %v1323_v37  ;;  %v1345_v62 = vsub.f32 %v54_v2, %v1320_v33 }
  0x22   :  { %873 = vmatpush3.msra.mxu0 %v1215_v28  ;;  %900 = vmatpush3.msra.mxu1 %v217_v55  ;;  %v40_v52 = vrot.slane %v32_v31, %v39_v34  ;;  %v245_v55 = vand.u32 4294901760, %v244_v19  ;;  %v252_v63 = vand.u32 4294901760, %v251_v39  ;;  %v278_v14 = vand.u32 4294901760, %v1335_v50 }
  0x23   :  { %874 = vmatprep.subr.mxu0 %v1108_v3  ;;  %901 = vmatprep.subr.mxu1 %v1108_v3  ;;  %v1347_v57 = vadd.s32 %v75_v53, %v72_v43  ;;  %v1360_v19 = vsub.f32 %v53_v9, %v1330_v41  ;;  %vm734_vm1 = vcmask 57344  }
  0x24   :  { %875 = vmatpush3.msra.mxu0 %v1238_v36  ;;  %902 = vmatpush3.msra.mxu1 %v224_v7  ;;  %v41_v48 = vcombine.high %v40_v52, %v40_v52  ;;  %v265_v7 = vsub.f32 %v1308_v13, %v264_v45  ;;  %v279_v52 = vsub.f32 %v1335_v50, %v278_v14 }
  0x25   :  { %876 = vmatprep.subr.mxu0 %v1108_v3  ;;  %903 = vmatprep.subr.mxu1 %v1108_v3  ;;  %v292_v53 = vand.u32 4294901760, %v1360_v19 }
  0x26   :  { %877 = vmatpush3.msra.mxu0 %v1249_v42  ;;  %904 = vmatpush3.msra.mxu1 %v231_v32  ;;  %v48_v2 = vrot.slane %v41_v48, %v39_v34  ;;  %v259_v32 = vand.u32 4294901760, %v258_v59  ;;  %v285_v34 = vand.u32 4294901760, %v1345_v62  ;;  %v266_v9 = vand.u32 4294901760, %v265_v7 }
  0x27   :  { %878 = vmatprep.subr.mxu0 %v1108_v3  ;;  %905 = vmatprep.subr.mxu1 %v1108_v3  ;;  %v293_v7 = vsub.f32 %v1360_v19, %v292_v53 }
  0x28   :  { %879 = vmatpush3.msra.mxu0 %v1275_v54  ;;  %906 = vmatpush3.msra.mxu1 %v238_v38  ;;  %v50_v39 = vmul.f32 %v48_v2, %v31_v0  ;;  %v272_v38 = vsub.f32 %v1323_v37, %v271_v61  ;;  %v286_v48 = vsub.f32 %v1345_v62, %v285_v34 }
  0x29   :  { %880 = vmatprep.subr.mxu0 %v1108_v3  ;;  %907 = vmatprep.subr.mxu1 %v1108_v3 }
  0x2a   :  { %881 = vmatpush3.msra.mxu0 %v1290_v60  ;;  %908 = vmatpush3.msra.mxu1 %v245_v55  ;;  %v51_v43 = vadd.f32 %v50_v39, %v32_v31  ;;  %v273_v59 = vand.u32 4294901760, %v272_v38  ;;  %v287_v2 = vand.u32 4294901760, %v286_v48  ;;  %v294_v39 = vand.u32 4294901760, %v293_v7 }
  0x2b   :  { %882 = vmatprep.subr.mxu0 %v1108_v3  ;;  %909 = vmatprep.subr.mxu1 %v1108_v3 }
  0x2c   :  { %883 = vmatpush3.msra.mxu0 %v1302_v8  ;;  %910 = vmatpush3.msra.mxu1 %v252_v63  ;;  %v52_v55 = vmul.f32 %v51_v43, %v31_v0  ;;  %v280_v63 = vand.u32 4294901760, %v279_v52 }
  0x2d   :  { %884 = vmatprep.subr.mxu0 %v1108_v3  ;;  %911 = vmatprep.subr.mxu1 %v1108_v3 }
  0x2e   :  { %885 = vmatpush3.msra.mxu0 %v1320_v33  ;;  %912 = vmatpush3.msra.mxu1 %v259_v32  ;;  %v1385_v31 = vand.u32 4294901760, %v52_v55 }
  0x2f   :  { %886 = vmatprep.subr.mxu0 %v1108_v3  ;;  %913 = vmatprep.subr.mxu1 %v1108_v3 }
  0x30   :  { %887 = vmatpush3.msra.mxu0 %v1330_v41  ;;  %914 = vmatpush3.msra.mxu1 %v266_v9  ;;  %v1393_v0 = vsub.f32 %v52_v55, %v1385_v31 }
  0x31   :  { %915 = vmatprep.subr.mxu1 %v1108_v3  ;;  %926 = vmatprep.subr.mxu0 %v1108_v3 }
  0x32   :  { %916 = vmatpush3.msra.mxu1 %v273_v59  ;;  %v176_v32 = vand.u32 4294901760, %v1393_v0 }
  0x33   :  { %917 = vmatprep.subr.mxu1 %v1108_v3 }
  0x34   :  { %918 = vmatpush3.msra.mxu1 %v280_v63  ;;  %v177_v38 = vsub.f32 %v1393_v0, %v176_v32 }
  0x35   :  { %919 = vmatprep.subr.mxu1 %v1108_v3 }
  0x36   :  { %920 = vmatpush3.msra.mxu1 %v287_v2  ;;  %v178_v9 = vand.u32 4294901760, %v177_v38 }
  0x37   :  { %921 = vmatprep.subr.mxu1 %v1108_v3 }
  0x38   :  { %922 = vmatpush3.msra.mxu1 %v294_v39  ;;  %889 = vmatmul.mubr.f32.vlgmr.msra.gmra.mxu0 %v178_v9 }
  0x39   :  { %924 = vmatmul.mubr.f32.vlgmr.msra.gmra.mxu1 %v1385_v31  ;;  %961 = vmatprep.subr.mxu1 %v1108_v3 }
  0x3a   :  { %962 = vmatpush3.msra.mxu1 %v1150_v4  ;;  %927 = vmatpush3.msra.mxu0 %v1184_v15  ;;  %v83_v15 = vstv %s752_s0 }
  0x3b   :  { %963 = vmatprep.subr.mxu1 %v1108_v3  ;;  %928 = vmatprep.subr.mxu0 %v1108_v3 }
  0x3c   :  { %964 = vmatpush3.msra.mxu1 %v1152_v5  ;;  %929 = vmatpush3.msra.mxu0 %v1187_v16 }
  0x3d   :  { %965 = vmatprep.subr.mxu1 %v1108_v3  ;;  %930 = vmatprep.subr.mxu0 %v1108_v3 }
  0x3e   :  { %966 = vmatpush3.msra.mxu1 %v1154_v6  ;;  %931 = vmatpush3.msra.mxu0 %v1192_v18  ;;  %v85_v18 = vstv %s751_s26 }
  0x3f   :  { %967 = vmatprep.subr.mxu1 %v1108_v3  ;;  %932 = vmatprep.subr.mxu0 %v1108_v3 }
  0x40   :  { %968 = vmatpush3.msra.mxu1 %v1166_v10  ;;  %933 = vmatpush3.msra.mxu0 %v1199_v20 }
  0x41   :  { %969 = vmatprep.subr.mxu1 %v1108_v3  ;;  %934 = vmatprep.subr.mxu0 %v1108_v3 }
  0x42   :  { %970 = vmatpush3.msra.mxu1 %v1168_v11  ;;  %935 = vmatpush3.msra.mxu0 %v1202_v21 }
  0x43   :  { %971 = vmatprep.subr.mxu1 %v1108_v3  ;;  %936 = vmatprep.subr.mxu0 %v1108_v3 }
  0x44   :  { %972 = vmatpush3.msra.mxu1 %v1170_v12  ;;  %937 = vmatpush3.msra.mxu0 %v1219_v30 }
  0x45   :  { %973 = vmatprep.subr.mxu1 %v1108_v3  ;;  %938 = vmatprep.subr.mxu0 %v1108_v3 }
  0x46   :  { %974 = vmatpush3.msra.mxu1 %v1189_v17  ;;  %939 = vmatpush3.msra.mxu0 %v1235_v35 }
  0x47   :  { %975 = vmatprep.subr.mxu1 %v1108_v3  ;;  %940 = vmatprep.subr.mxu0 %v1108_v3 }
  0x48   :  { %976 = vmatpush3.msra.mxu1 %v1208_v25  ;;  %941 = vmatpush3.msra.mxu0 %v1255_v44 }
  0x49   :  { %977 = vmatprep.subr.mxu1 %v1108_v3  ;;  %942 = vmatprep.subr.mxu0 %v1108_v3 }
  0x4a   :  { %978 = vmatpush3.msra.mxu1 %v1215_v28  ;;  %943 = vmatpush3.msra.mxu0 %v1260_v47 }
  0x4b   :  { %979 = vmatprep.subr.mxu1 %v1108_v3  ;;  %944 = vmatprep.subr.mxu0 %v1108_v3 }
  0x4c   :  { %980 = vmatpush3.msra.mxu1 %v1238_v36  ;;  %945 = vmatpush3.msra.mxu0 %v1269_v51 }
  0x4d   :  { %981 = vmatprep.subr.mxu1 %v1108_v3  ;;  %946 = vmatprep.subr.mxu0 %v1108_v3 }
  0x4e   :  { %982 = vmatpush3.msra.mxu1 %v1249_v42  ;;  %947 = vmatpush3.msra.mxu0 %v1284_v58 }
  0x4f   :  { %983 = vmatprep.subr.mxu1 %v1108_v3  ;;  %948 = vmatprep.subr.mxu0 %v1108_v3 }
  0x50   :  { %958 = vmatprep.mubr.msk.f32.mxu0 %vm1109_vm0, %v1108_v3  ;;  %949 = vmatpush3.msra.mxu0 %v1308_v13 }
  0x51   :  { %984 = vmatpush3.msra.mxu1 %v1275_v54  ;;  %950 = vmatprep.subr.mxu0 %v1108_v3 }
  0x52   :  { %985 = vmatprep.subr.mxu1 %v1108_v3  ;;  %951 = vmatpush3.msra.mxu0 %v1323_v37 }
  0x53   :  { %986 = vmatpush3.msra.mxu1 %v1290_v60  ;;  %952 = vmatprep.subr.mxu0 %v1108_v3 }
  0x54   :  { %987 = vmatprep.subr.mxu1 %v1108_v3  ;;  %953 = vmatpush3.msra.mxu0 %v1335_v50 }
  0x55   :  { %988 = vmatpush3.msra.mxu1 %v1302_v8  ;;  %954 = vmatprep.subr.mxu0 %v1108_v3 }
  0x56   :  { %989 = vmatprep.subr.mxu1 %v1108_v3  ;;  %955 = vmatpush3.msra.mxu0 %v1345_v62 }
  0x57   :  { %990 = vmatpush3.msra.mxu1 %v1320_v33  ;;  %956 = vmatprep.subr.mxu0 %v1108_v3 }
  0x58   :  { %991 = vmatprep.subr.mxu1 %v1108_v3  ;;  %957 = vmatpush3.msra.mxu0 %v1360_v19 }
  0x59   :  { %992 = vmatpush3.msra.mxu1 %v1330_v41  ;;  %959 = vmatmul.mubr.f32.vlgmr.msra.gmra.mxu0 %v1393_v0 }
  0x5a   :  { %996 = vmatprep.subr.mxu0 %v1108_v3  ;;  %993 = vmatprep.mubr.msk.f32.mxu1 %vm1109_vm0, %v1108_v3 }
  0x5b   :  { %997 = vmatpush3.msra.mxu0 %v187_v22  ;;  %994 = vmatmul.mubr.f32.vlgmr.msra.gmra.mxu1 %v176_v32 }
  0x5c   :  { %998 = vmatprep.subr.mxu0 %v1108_v3  ;;  %1031 = vmatprep.subr.mxu1 %v1108_v3 }
  0x5d   :  { %999 = vmatpush3.msra.mxu0 %v194_v23  ;;  %1032 = vmatpush3.msra.mxu1 %v1150_v4 }
  0x5e   :  { %1000 = vmatprep.subr.mxu0 %v1108_v3  ;;  %1033 = vmatprep.subr.mxu1 %v1108_v3 }
  0x5f   :  { %1001 = vmatpush3.msra.mxu0 %v201_v24  ;;  %1034 = vmatpush3.msra.mxu1 %v1152_v5  ;;  %v88_v24 = vstv %s79_s27 }
  0x60   :  { %1002 = vmatprep.subr.mxu0 %v1108_v3  ;;  %1035 = vmatprep.subr.mxu1 %v1108_v3 }
  0x61   :  { %1003 = vmatpush3.msra.mxu0 %v208_v27  ;;  %1036 = vmatpush3.msra.mxu1 %v1154_v6 }
  0x62   :  { %1004 = vmatprep.subr.mxu0 %v1108_v3  ;;  %1037 = vmatprep.subr.mxu1 %v1108_v3 }
  0x63   :  { %1005 = vmatpush3.msra.mxu0 %v215_v29  ;;  %1038 = vmatpush3.msra.mxu1 %v1166_v10 }
  0x64   :  { %1006 = vmatprep.subr.mxu0 %v1108_v3  ;;  %1039 = vmatprep.subr.mxu1 %v1108_v3 }
  0x65   :  { %1007 = vmatpush3.msra.mxu0 %v222_v40  ;;  %1040 = vmatpush3.msra.mxu1 %v1168_v11  ;;  %v77_v11 = vcvt.s32.f32 %v1347_v57 }
  0x66   :  { %1008 = vmatprep.subr.mxu0 %v1108_v3  ;;  %1041 = vmatprep.subr.mxu1 %v1108_v3 }
  0x67   :  { %1009 = vmatpush3.msra.mxu0 %v229_v46  ;;  %1042 = vmatpush3.msra.mxu1 %v1170_v12  ;;  %v78_v12 = vmul.f32 0.01, %v77_v11 }
  0x68   :  { %1010 = vmatprep.subr.mxu0 %v1108_v3  ;;  %1043 = vmatprep.subr.mxu1 %v1108_v3 }
  0x69   :  { %1011 = vmatpush3.msra.mxu0 %v236_v49  ;;  %1044 = vmatpush3.msra.mxu1 %v1189_v17  ;;  %v84_v17 = vmul.f32 %v83_v15, %v78_v12 }
  0x6a   :  { %1012 = vmatprep.subr.mxu0 %v1108_v3  ;;  %1045 = vmatprep.subr.mxu1 %v1108_v3 }
  0x6b   :  { %1013 = vmatpush3.msra.mxu0 %v243_v56  ;;  %1046 = vmatpush3.msra.mxu1 %v1208_v25  ;;  %v86_v22 = vadd.f32 %v85_v18, %v84_v17 }
  0x6c   :  { %1014 = vmatprep.subr.mxu0 %v1108_v3  ;;  %1047 = vmatprep.subr.mxu1 %v1108_v3 }
  0x6d   :  { %1015 = vmatpush3.msra.mxu0 %v250_v1  ;;  %1048 = vmatpush3.msra.mxu1 %v1215_v28  ;;  %v87_v23 = vmul.f32 %v86_v22, %v78_v12  ;;  %v91_v28 = vstv %s753_s28 }
  0x6e   :  { %1016 = vmatprep.subr.mxu0 %v1108_v3  ;;  %1049 = vmatprep.subr.mxu1 %v1108_v3 }
  0x6f   :  { %1017 = vmatpush3.msra.mxu0 %v257_v26  ;;  %1050 = vmatpush3.msra.mxu1 %v1238_v36  ;;  %v89_v25 = vadd.f32 %v88_v24, %v87_v23 }
  0x70   :  { %1018 = vmatprep.subr.mxu0 %v1108_v3  ;;  %1051 = vmatprep.subr.mxu1 %v1108_v3 }
  0x71   :  { %1019 = vmatpush3.msra.mxu0 %v264_v45  ;;  %1052 = vmatpush3.msra.mxu1 %v1249_v42  ;;  %v90_v27 = vmul.f32 %v89_v25, %v78_v12 }
  0x72   :  { %1020 = vmatprep.subr.mxu0 %v1108_v3  ;;  %1053 = vmatprep.subr.mxu1 %v1108_v3 }
  0x73   :  { %1021 = vmatpush3.msra.mxu0 %v271_v61  ;;  %1028 = vmatprep.mubr.msk.f32.mxu0 %vm1109_vm0, %v1108_v3  ;;  %v92_v29 = vadd.f32 %v91_v28, %v90_v27 }
  0x74   :  { %1022 = vmatprep.subr.mxu0 %v1108_v3  ;;  %1054 = vmatpush3.msra.mxu1 %v1275_v54 }
  0x75   :  { %1023 = vmatpush3.msra.mxu0 %v278_v14  ;;  %1055 = vmatprep.subr.mxu1 %v1108_v3 }
  0x76   :  { %1024 = vmatprep.subr.mxu0 %v1108_v3  ;;  %1056 = vmatpush3.msra.mxu1 %v1290_v60 }
  0x77   :  { %1025 = vmatpush3.msra.mxu0 %v285_v34  ;;  %1057 = vmatprep.subr.mxu1 %v1108_v3 }
  0x78   :  { %1026 = vmatprep.subr.mxu0 %v1108_v3  ;;  %1058 = vmatpush3.msra.mxu1 %v1302_v8 }
  0x79   :  { %1027 = vmatpush3.msra.mxu0 %v292_v53  ;;  %1059 = vmatprep.subr.mxu1 %v1108_v3 }
  0x7a   :  { %1029 = vmatmul.mubr.f32.vlgmr.msra.gmra.mxu0 %v1385_v31  ;;  %1060 = vmatpush3.msra.mxu1 %v1320_v33 }
  0x7b   :  { %1063 = vmatprep.mubr.msk.f32.mxu1 %vm1109_vm0, %v1108_v3  ;;  %1061 = vmatprep.subr.mxu1 %v1108_v3 }
  0x7c   :  { %1062 = vmatpush3.msra.mxu1 %v1330_v41 }
  0x7d   :  { %1064 = vmatmul.mubr.f32.vlgmr.msra.gmra.mxu1 %v1385_v31 }
  0xf8   :  { %v180_v5 = vpop.f32.mrf.mxu0 }
  0xf9   :  { %v331_v4 = vpop.f32.mrf.mxu1  ;;  %v181_v30 = vadd.f32 %v180_v5, %v92_v29 }
  0xfa   :  { %v890_v10 = vpop.f32.mrf.mxu0 }
  0xfb   :  { %v925_v6 = vpop.f32.mrf.mxu1  ;;  %v332_v35 = vadd.f32 %v331_v4, %v181_v30 }
 0x119   :  { %v435_v16 = vpop.f32.mrf.mxu0 }
 0x11a   :  { %v436_v36 = vadd.f32 %v435_v16, %v332_v35 }
 0x11b   :  { %v960_v20 = vpop.f32.mrf.mxu0  ;;  %v524_v3 = vpop.f32.mrf.mxu1 }
 0x11c   :  { %v525_v42 = vadd.f32 %v524_v3, %v436_v36 }
 0x11d   :  { %v995_v21 = vpop.f32.mrf.mxu1 }
 0x13a   :  { %v643_v40 = vpop.f32.mrf.mxu0 }
 0x13b   :  { %v644_v46 = vadd.f32 %v643_v40, %v525_v42 }
 0x13c   :  { %v1030_v44 = vpop.f32.mrf.mxu0 }
 0x13d   :  { %v730_v47 = vpop.f32.mrf.mxu1 }
 0x13e   :  { %v731_v49 = vadd.f32 %v730_v47, %v644_v46 }
 0x13f   :  { %v1065_v51 = vpop.f32.mrf.mxu1 }
 0x140   :  { %735 = vst.msk [vmem:[#allocation5] sm:$0x1] %vm734_vm1, %v731_v49 }
 0x141   :  { %1094 = shalt.err (!%p1091_p9)
}
 0x142   :  { %745 = dma.vmem_to_hbm [thread:$0]  %s743_s30, 16, %s1567_s4, [#allocation3]  }
 0x143   :  { %1105 = dma.done.wait [#allocation3], 16  }
 0x144   :  { %1106 = vsyncadd [#allocation3], 4294967280 }
 0x145   :  { %749 = vsyncpa [#allocation3], 1 }
 0x146   :  { %750 = vsyncpa [#allocation4], 1 }

</bundles_post_ra>
